<compile_context>
chip_gen: v6e
topology: v6e:2x2x1
jax: 0.10.0
libtpu: 0.0.40
codegen_flags: <defaults>
</compile_context>

<pallas_src>
import jax
import jax.numpy as jnp
from jax.experimental import pallas as pl
from jax.experimental.pallas import tpu as pltpu


_LIVE_BUDGET_OVERRIDE = None  # test hook: force small tiles / multi-tile grids


def _live_budget_bytes():
    """Per-step live VMEM budget for the 7 streamed (tile_h, w_blk) f32 blocks."""
    if _LIVE_BUDGET_OVERRIDE is not None:
        return _LIVE_BUDGET_OVERRIDE
    try:
        kind = jax.devices()[0].device_kind.lower()
    except Exception:
        kind = ""
    if "v5" in kind:
        return 6 << 20    # v5e scoped-VMEM default is 16 MiB; 2x-buffered ~12 MiB
    return 10 << 20       # v6e / v7x: amortize ~0.35us/step; 2x-buffered ~20 MiB


def _fused_masked_mse_stats(region_label, region_pre,
                            affinity_label, affinity_pre, mask):
    """Single fused pallas_call over both map types, no host-side padding.

    Returns (neg_loss_region, neg_loss_affinity, stats) with neg maps at the
    true (B, H, W) shape and stats (B, 6):
    [n_pos_r, pos_sum_r, sq_sum_r, n_pos_a, pos_sum_a, sq_sum_a].
    """
    B, H, W = region_label.shape
    f32 = jnp.float32
    # Inputs assumed f32 (no-op cast).  If the model ever emits bf16 maps,
    # stream them as bf16 and upcast in-kernel instead (HBM-bound kernel).
    inputs = [jnp.asarray(x, f32) for x in (region_label, region_pre,
                                            affinity_label, affinity_pre, mask)]

    # Lane-dense block width (multiple of 128); ragged W tail masked in-kernel.
    w_blk = max(128, ((W + 127) // 128) * 128)

    # Tile height: pick the number of tiles first, then a tile_h that nearly
    # divides H (rounded up to a multiple of 8) -> waste < 8 rows per tile.
    budget = _live_budget_bytes()
    bytes_per_8rows = 7 * 8 * w_blk * 4          # 5 input + 2 output blocks, f32
    cap8 = max(1, budget // bytes_per_8rows)     # tile height in 8-row units
    h8 = (H + 7) // 8
    n_tiles = -(-h8 // cap8)                     # cdiv
    tile8 = -(-h8 // n_tiles)                    # cdiv
    tile_h = tile8 * 8
    n_tiles = -(-h8 // tile8)                    # == cdiv(H, tile_h)

    # Split H tiles into (outer parallel, inner arbitrary) so v7x megacore can
    # shard even at B=1.  Only split when it divides evenly (no empty blocks).
    if n_tiles >= 2 and n_tiles % 2 == 0:
        n_outer, n_inner = 2, n_tiles // 2
    else:
        n_outer, n_inner = 1, n_tiles

    block = (1, tile_h, w_blk)
    imap = lambda b, ho, hi: (b, ho * n_inner + hi, 0)

    def kernel(r_lab_ref, r_pre_ref, a_lab_ref, a_pre_ref, mask_ref,
               r_neg_ref, a_neg_ref, stats_ref):
        ho = pl.program_id(1)
        hi = pl.program_id(2)

        @pl.when(hi == 0)
        def _init():
            stats_ref[...] = jnp.zeros_like(stats_ref)

        # Validity mask for the ragged H/W tail of partial blocks.  Reads from
        # the out-of-bounds part of a block are unspecified; jnp.where (select)
        # keeps the reductions NaN-safe.
        ht = ho * n_inner + hi
        row0 = ht * tile_h
        rows = jax.lax.broadcasted_iota(jnp.int32, (1, tile_h, w_blk), 1)
        cols = jax.lax.broadcasted_iota(jnp.int32, (1, tile_h, w_blk), 2)
        valid = jnp.logical_and(rows + row0 < H, cols < W)

        mask_t = mask_ref[...]

        def process(lab_ref, pre_ref, neg_ref):
            lab = lab_ref[...]
            diff = pre_ref[...] - lab
            sq = jnp.where(valid, diff * diff * mask_t, 0.0)      # MSE * mask
            pos = jnp.where(jnp.logical_and(valid, lab >= 0.1), 1.0, 0.0)
            sq_pos = sq * pos
            neg_ref[...] = sq - sq_pos            # == sq * (label < 0.1), exact
            return jnp.sum(pos), jnp.sum(sq_pos), jnp.sum(sq)

        np_r, ps_r, ss_r = process(r_lab_ref, r_pre_ref, r_neg_ref)
        np_a, ps_a, ss_a = process(a_lab_ref, a_pre_ref, a_neg_ref)

        # Pack 6 scalars into one lane-dense row and accumulate across H tiles.
        # n_neg / neg_sum are derived algebraically outside the kernel.
        lane = jax.lax.broadcasted_iota(jnp.int32, (1, 1, 1, 128), 3)
        packed = (jnp.where(lane == 0, np_r, 0.0)
                  + jnp.where(lane == 1, ps_r, 0.0)
                  + jnp.where(lane == 2, ss_r, 0.0)
                  + jnp.where(lane == 3, np_a, 0.0)
                  + jnp.where(lane == 4, ps_a, 0.0)
                  + jnp.where(lane == 5, ss_a, 0.0))
        stats_ref[...] += packed

    neg_r, neg_a, stats = pl.pallas_call(
        kernel,
        out_shape=(
            jax.ShapeDtypeStruct((B, H, W), f32),
            jax.ShapeDtypeStruct((B, H, W), f32),
            jax.ShapeDtypeStruct((B, n_outer, 1, 128), f32),
        ),
        grid_spec=pltpu.PrefetchScalarGridSpec(
            num_scalar_prefetch=0,
            grid=(B, n_outer, n_inner),
            in_specs=[pl.BlockSpec(block, imap) for _ in range(5)],
            out_specs=[
                pl.BlockSpec(block, imap),
                pl.BlockSpec(block, imap),
                pl.BlockSpec((1, 1, 1, 128), lambda b, ho, hi: (b, ho, 0, 0)),
            ],
        ),
        compiler_params=pltpu.CompilerParams(
            dimension_semantics=("parallel", "parallel", "arbitrary"),
            vmem_limit_bytes=2 * budget + (8 << 20)),
    )(*inputs)

    stats = jnp.sum(stats, axis=1)[:, 0, :6]      # reduce the megacore split
    return neg_r, neg_a, stats


def _single_image_loss(neg_loss_maps, n_pos, pos_sum, sq_sum, neg_rto, n_min_neg):
    """OHEM combine matching Maploss_v3.single_image_loss semantics."""
    B = neg_loss_maps.shape[0]
    flat = neg_loss_maps.reshape(B, -1)           # true H*W, no padding
    hw = flat.shape[1]

    n_neg = jnp.float32(hw) - n_pos               # pos/neg partition the image
    neg_sum = sq_sum - pos_sum                    # == sum(sq * neg)

    positive_loss = pos_sum / jnp.maximum(n_pos, 1e-12)

    # TODO(synk): replace the XLA descending sort + cumsum with an in-kernel
    # histogram/threshold top-k-sum so neg maps never round-trip through HBM.
    sorted_desc = -jnp.sort(-flat, axis=1)
    csum = jnp.cumsum(sorted_desc, axis=1)

    def topk_sum(k_int):                          # k_int: (B,) int32, k >= 1
        idx = jnp.clip(k_int - 1, 0, hw - 1)
        return jnp.take_along_axis(csum, idx[:, None], axis=1)[:, 0]

    n_min_i = max(int(n_min_neg), 1)              # guard: n_min_neg >= 1
    n_min_f = jnp.float32(n_min_i)

    # n_pos != 0 branch
    n_hard = jnp.maximum(n_min_f, neg_rto * n_pos)
    k_hard = n_hard.astype(jnp.int32)             # int() truncation (positive)
    neg_loss_hard = topk_sum(k_hard) / n_hard
    neg_loss_all = neg_sum / jnp.maximum(n_neg, 1.0)   # guard n_neg == 0
    neg_loss_pos_present = jnp.where(n_neg < neg_rto * n_pos,
                                     neg_loss_all, neg_loss_hard)

    # n_pos == 0 branch
    k_min = jnp.full((B,), n_min_i, dtype=jnp.int32)
    neg_loss_no_pos = topk_sum(k_min) / n_min_f

    negative_loss = jnp.where(n_pos != 0, neg_loss_pos_present, neg_loss_no_pos)
    return (jnp.sum(positive_loss) + jnp.sum(negative_loss)) / B


def maploss_v3(region_scores_label, affinity_scores_label,
               region_scores_pre, affinity_scores_pre,
               mask, neg_rto, n_min_neg):
    """Forward pass of Maploss_v3 (region + affinity masked-MSE with OHEM)."""
    assert region_scores_label.shape == region_scores_pre.shape
    assert affinity_scores_label.shape == affinity_scores_pre.shape

    neg_r, neg_a, stats = _fused_masked_mse_stats(
        region_scores_label, region_scores_pre,
        affinity_scores_label, affinity_scores_pre, mask)

    char_loss = _single_image_loss(neg_r, stats[:, 0], stats[:, 1], stats[:, 2],
                                   neg_rto, n_min_neg)
    affi_loss = _single_image_loss(neg_a, stats[:, 3], stats[:, 4], stats[:, 5],
                                   neg_rto, n_min_neg)
    return char_loss + affi_loss


def _reference_loss(region_label, affinity_label, region_pre, affinity_pre,
                    mask, neg_rto, n_min_neg):
    """Pure-JAX transliteration of the PyTorch module (per-image Python loop)."""
    def single(loss_maps, labels):
        batch = loss_maps.shape[0]
        pos_l, neg_l = 0.0, 0.0
        for b in range(batch):
            sl, lab = loss_maps[b], labels[b]
            pos = (lab >= 0.1).astype(jnp.float32)
            n_pos = float(jnp.sum(pos))
            pos_l += float(jnp.sum(sl * pos)) / max(n_pos, 1e-12)
            neg = (lab < 0.1).astype(jnp.float32)
            n_neg = float(jnp.sum(neg))
            neg_region = sl * neg
            if n_pos != 0:
                if n_neg < neg_rto * n_pos:
                    neg_l += float(jnp.sum(neg_region)) / n_neg
                else:
                    n_hard = max(float(n_min_neg), neg_rto * n_pos)
                    top = jax.lax.top_k(neg_region.reshape(-1), int(n_hard))[0]
                    neg_l += float(jnp.sum(top)) / n_hard
            else:
                top = jax.lax.top_k(neg_region.reshape(-1), int(n_min_neg))[0]
                neg_l += float(jnp.sum(top)) / n_min_neg
        return (pos_l + neg_l) / batch

    loss_region = (region_pre - region_label) ** 2 * mask
    loss_affinity = (affinity_pre - affinity_label) ** 2 * mask
    return (single(loss_region, region_label)
            + single(loss_affinity, affinity_label))


def _make_inputs(H, W, seed):
    key = jax.random.fold_in(jax.random.PRNGKey(0), seed)
    k1, k2, k3, k4, k5, k6 = jax.random.split(key, 6)
    # Region image 0: sparse positives -> hard-negative top-k branch.
    # Region image 1: no positives     -> n_pos == 0 branch.
    region_label = jnp.concatenate(
        [jax.random.uniform(k1, (1, H, W), dtype=jnp.float32) * 0.13,
         jax.random.uniform(k2, (1, H, W), dtype=jnp.float32) * 0.05], axis=0)
    # Affinity: dense positives -> "use all negatives" branch.
    affinity_label = jax.random.uniform(k3, (2, H, W), dtype=jnp.float32)
    region_pre = jax.random.uniform(k4, (2, H, W), dtype=jnp.float32)
    affinity_pre = jax.random.uniform(k5, (2, H, W), dtype=jnp.float32)
    mask = (jax.random.uniform(k6, (2, H, W)) > 0.1).astype(jnp.float32)
    return region_label, affinity_label, region_pre, affinity_pre, mask


if __name__ == "__main__":
    neg_rto = 3.0
    n_min_neg = 100
    loss_fn = jax.jit(maploss_v3, static_argnames=("n_min_neg",))

    # (H, W, seed, budget_override): aligned; ragged H/W; ragged + multi-tile
    # with the H-tile megacore split exercised via a tiny forced tile budget.
    cases = [
        (16, 128, 0, None),
        (20, 200, 1, None),
        (60, 200, 2, 128 << 10),
    ]
    for (H, W, seed, override) in cases:
        _LIVE_BUDGET_OVERRIDE = override
        inp = _make_inputs(H, W, seed)
        loss = jax.block_until_ready(loss_fn(*inp, neg_rto, n_min_neg=n_min_neg))
        ref = _reference_loss(*inp, neg_rto, n_min_neg)
        assert jnp.isfinite(loss), f"loss is not finite: {loss}"
        assert abs(float(loss) - ref) <= 2e-3 + 2e-3 * abs(ref), \
            (H, W, float(loss), ref)
        _LIVE_BUDGET_OVERRIDE = None

    print("KERNEL_OK")
</pallas_src>

<mosaic_0001>
module attributes {stable_mosaic.version = 11 : i64} {
  func.func @kernel(%arg0: i32, %arg1: i32, %arg2: i32, %arg3: memref<1x16x128xf32, #tpu.memory_space<vmem>>, %arg4: memref<1x16x128xf32, #tpu.memory_space<vmem>>, %arg5: memref<1x16x128xf32, #tpu.memory_space<vmem>>, %arg6: memref<1x16x128xf32, #tpu.memory_space<vmem>>, %arg7: memref<1x16x128xf32, #tpu.memory_space<vmem>>, %arg8: memref<1x16x128xf32, #tpu.memory_space<vmem>>, %arg9: memref<1x16x128xf32, #tpu.memory_space<vmem>>, %arg10: memref<1x1x1x128xf32, #tpu.memory_space<vmem>>) attributes {dimension_semantics = [#tpu.dimension_semantics<parallel>, #tpu.dimension_semantics<parallel>, #tpu.dimension_semantics<arbitrary>], iteration_bounds = array<i64: 2, 1, 1>, scalar_prefetch = 0 : i64, scratch_operands = 0 : i64, tpu.core_type = #tpu.core_type<tc>, window_params = [{transform_indices = @transform_0, window_bounds = array<i64: 1, 16, 128>}, {transform_indices = @transform_1, window_bounds = array<i64: 1, 16, 128>}, {transform_indices = @transform_2, window_bounds = array<i64: 1, 16, 128>}, {transform_indices = @transform_3, window_bounds = array<i64: 1, 16, 128>}, {transform_indices = @transform_4, window_bounds = array<i64: 1, 16, 128>}, {transform_indices = @transform_5, window_bounds = array<i64: 1, 16, 128>}, {transform_indices = @transform_6, window_bounds = array<i64: 1, 16, 128>}, {transform_indices = @transform_7, window_bounds = array<i64: 1, 1, 1, 128>}]} {
    %c0_i32 = arith.constant 0 : i32
    %0 = arith.cmpi eq, %arg2, %c0_i32 : i32
    %1 = arith.extui %0 : i1 to i32
    %c0_i32_0 = arith.constant 0 : i32
    %2 = arith.cmpi ne, %1, %c0_i32_0 : i32
    scf.if %2 {
      %cst_51 = arith.constant 0.000000e+00 : f32
      %111 = vector.broadcast %cst_51 : f32 to vector<1x1x1x128xf32>
      %c0_52 = arith.constant 0 : index
      %c0_53 = arith.constant 0 : index
      %c0_54 = arith.constant 0 : index
      %c0_55 = arith.constant 0 : index
      %112 = vector.load %arg10[%c0_52, %c0_53, %c0_54, %c0_55] : memref<1x1x1x128xf32, #tpu.memory_space<vmem>>, vector<1x1x1x128xf32>
      tpu.vector_store %arg10[%c0_52, %c0_53, %c0_54, %c0_55], %111 {strides = array<i32>} : memref<1x1x1x128xf32, #tpu.memory_space<vmem>>, vector<1x1x1x128xf32>,
    } else {
    }
    %c1_i32 = arith.constant 1 : i32
    %3 = arith.muli %arg1, %c1_i32 : i32
    %4 = arith.addi %3, %arg2 : i32
    %c16_i32 = arith.constant 16 : i32
    %5 = arith.muli %4, %c16_i32 : i32
    %6 = tpu.iota {dimensions = array<i32: 1>} : vector<1x16x128xi32>
    %7 = tpu.iota {dimensions = array<i32: 2>} : vector<1x16x128xi32>
    %8 = vector.broadcast %5 : i32 to vector<1x16x128xi32>
    %9 = arith.addi %6, %8 : vector<1x16x128xi32>
    %c16_i32_1 = arith.constant 16 : i32
    %10 = vector.broadcast %c16_i32_1 : i32 to vector<1x16x128xi32>
    %11 = arith.cmpi slt, %9, %10 : vector<1x16x128xi32>
    %c128_i32 = arith.constant 128 : i32
    %12 = vector.broadcast %c128_i32 : i32 to vector<1x16x128xi32>
    %13 = arith.cmpi slt, %7, %12 : vector<1x16x128xi32>
    %14 = arith.andi %11, %13 : vector<1x16x128xi1>
    %c0 = arith.constant 0 : index
    %c0_2 = arith.constant 0 : index
    %c0_3 = arith.constant 0 : index
    %15 = vector.load %arg7[%c0, %c0_2, %c0_3] : memref<1x16x128xf32, #tpu.memory_space<vmem>>, vector<1x16x128xf32>
    %c0_4 = arith.constant 0 : index
    %c0_5 = arith.constant 0 : index
    %c0_6 = arith.constant 0 : index
    %16 = vector.load %arg3[%c0_4, %c0_5, %c0_6] : memref<1x16x128xf32, #tpu.memory_space<vmem>>, vector<1x16x128xf32>
    %c0_7 = arith.constant 0 : index
    %c0_8 = arith.constant 0 : index
    %c0_9 = arith.constant 0 : index
    %17 = vector.load %arg4[%c0_7, %c0_8, %c0_9] : memref<1x16x128xf32, #tpu.memory_space<vmem>>, vector<1x16x128xf32>
    %18 = arith.subf %17, %16 : vector<1x16x128xf32>
    %19 = arith.mulf %18, %18 : vector<1x16x128xf32>
    %20 = arith.mulf %19, %15 : vector<1x16x128xf32>
    %cst = arith.constant 0.000000e+00 : f32
    %21 = vector.broadcast %cst : f32 to vector<1x16x128xf32>
    %22 = arith.select %14, %20, %21 : vector<1x16x128xi1>, vector<1x16x128xf32>
    %cst_10 = arith.constant 1.000000e-01 : f32
    %23 = vector.broadcast %cst_10 : f32 to vector<1x16x128xf32>
    %24 = arith.cmpf oge, %16, %23 : vector<1x16x128xf32>
    %25 = arith.andi %14, %24 : vector<1x16x128xi1>
    %cst_11 = arith.constant 1.000000e+00 : f32
    %cst_12 = arith.constant 0.000000e+00 : f32
    %26 = vector.broadcast %cst_11 : f32 to vector<1x16x128xf32>
    %27 = vector.broadcast %cst_12 : f32 to vector<1x16x128xf32>
    %28 = arith.select %25, %26, %27 : vector<1x16x128xi1>, vector<1x16x128xf32>
    %29 = arith.mulf %22, %28 : vector<1x16x128xf32>
    %30 = arith.subf %22, %29 : vector<1x16x128xf32>
    %c0_13 = arith.constant 0 : index
    %c0_14 = arith.constant 0 : index
    %c0_15 = arith.constant 0 : index
    %31 = vector.load %arg8[%c0_13, %c0_14, %c0_15] : memref<1x16x128xf32, #tpu.memory_space<vmem>>, vector<1x16x128xf32>
    tpu.vector_store %arg8[%c0_13, %c0_14, %c0_15], %30 {strides = array<i32>} : memref<1x16x128xf32, #tpu.memory_space<vmem>>, vector<1x16x128xf32>,
    %32 = vector.shape_cast %28 : vector<1x16x128xf32> to vector<1x1x16x128xf32>
    %cst_16 = arith.constant dense<0.000000e+00> : vector<1xf32>
    %33 = vector.multi_reduction <add>, %32, %cst_16 [1, 2, 3] : vector<1x1x16x128xf32> to vector<1xf32>
    %34 = vector.shape_cast %33 : vector<1xf32> to vector<1x1x1x1xf32>
    %35 = vector.extract %34[0, 0, 0, 0] : f32 from vector<1x1x1x1xf32>
    %36 = vector.shape_cast %29 : vector<1x16x128xf32> to vector<1x1x16x128xf32>
    %cst_17 = arith.constant dense<0.000000e+00> : vector<1xf32>
    %37 = vector.multi_reduction <add>, %36, %cst_17 [1, 2, 3] : vector<1x1x16x128xf32> to vector<1xf32>
    %38 = vector.shape_cast %37 : vector<1xf32> to vector<1x1x1x1xf32>
    %39 = vector.extract %38[0, 0, 0, 0] : f32 from vector<1x1x1x1xf32>
    %40 = vector.shape_cast %22 : vector<1x16x128xf32> to vector<1x1x16x128xf32>
    %cst_18 = arith.constant dense<0.000000e+00> : vector<1xf32>
    %41 = vector.multi_reduction <add>, %40, %cst_18 [1, 2, 3] : vector<1x1x16x128xf32> to vector<1xf32>
    %42 = vector.shape_cast %41 : vector<1xf32> to vector<1x1x1x1xf32>
    %43 = vector.extract %42[0, 0, 0, 0] : f32 from vector<1x1x1x1xf32>
    %c0_19 = arith.constant 0 : index
    %c0_20 = arith.constant 0 : index
    %c0_21 = arith.constant 0 : index
    %44 = vector.load %arg5[%c0_19, %c0_20, %c0_21] : memref<1x16x128xf32, #tpu.memory_space<vmem>>, vector<1x16x128xf32>
    %c0_22 = arith.constant 0 : index
    %c0_23 = arith.constant 0 : index
    %c0_24 = arith.constant 0 : index
    %45 = vector.load %arg6[%c0_22, %c0_23, %c0_24] : memref<1x16x128xf32, #tpu.memory_space<vmem>>, vector<1x16x128xf32>
    %46 = arith.subf %45, %44 : vector<1x16x128xf32>
    %47 = arith.mulf %46, %46 : vector<1x16x128xf32>
    %48 = arith.mulf %47, %15 : vector<1x16x128xf32>
    %cst_25 = arith.constant 0.000000e+00 : f32
    %49 = vector.broadcast %cst_25 : f32 to vector<1x16x128xf32>
    %50 = arith.select %14, %48, %49 : vector<1x16x128xi1>, vector<1x16x128xf32>
    %cst_26 = arith.constant 1.000000e-01 : f32
    %51 = vector.broadcast %cst_26 : f32 to vector<1x16x128xf32>
    %52 = arith.cmpf oge, %44, %51 : vector<1x16x128xf32>
    %53 = arith.andi %14, %52 : vector<1x16x128xi1>
    %cst_27 = arith.constant 1.000000e+00 : f32
    %cst_28 = arith.constant 0.000000e+00 : f32
    %54 = vector.broadcast %cst_27 : f32 to vector<1x16x128xf32>
    %55 = vector.broadcast %cst_28 : f32 to vector<1x16x128xf32>
    %56 = arith.select %53, %54, %55 : vector<1x16x128xi1>, vector<1x16x128xf32>
    %57 = arith.mulf %50, %56 : vector<1x16x128xf32>
    %58 = arith.subf %50, %57 : vector<1x16x128xf32>
    %c0_29 = arith.constant 0 : index
    %c0_30 = arith.constant 0 : index
    %c0_31 = arith.constant 0 : index
    %59 = vector.load %arg9[%c0_29, %c0_30, %c0_31] : memref<1x16x128xf32, #tpu.memory_space<vmem>>, vector<1x16x128xf32>
    tpu.vector_store %arg9[%c0_29, %c0_30, %c0_31], %58 {strides = array<i32>} : memref<1x16x128xf32, #tpu.memory_space<vmem>>, vector<1x16x128xf32>,
    %60 = vector.shape_cast %56 : vector<1x16x128xf32> to vector<1x1x16x128xf32>
    %cst_32 = arith.constant dense<0.000000e+00> : vector<1xf32>
    %61 = vector.multi_reduction <add>, %60, %cst_32 [1, 2, 3] : vector<1x1x16x128xf32> to vector<1xf32>
    %62 = vector.shape_cast %61 : vector<1xf32> to vector<1x1x1x1xf32>
    %63 = vector.extract %62[0, 0, 0, 0] : f32 from vector<1x1x1x1xf32>
    %64 = vector.shape_cast %57 : vector<1x16x128xf32> to vector<1x1x16x128xf32>
    %cst_33 = arith.constant dense<0.000000e+00> : vector<1xf32>
    %65 = vector.multi_reduction <add>, %64, %cst_33 [1, 2, 3] : vector<1x1x16x128xf32> to vector<1xf32>
    %66 = vector.shape_cast %65 : vector<1xf32> to vector<1x1x1x1xf32>
    %67 = vector.extract %66[0, 0, 0, 0] : f32 from vector<1x1x1x1xf32>
    %68 = vector.shape_cast %50 : vector<1x16x128xf32> to vector<1x1x16x128xf32>
    %cst_34 = arith.constant dense<0.000000e+00> : vector<1xf32>
    %69 = vector.multi_reduction <add>, %68, %cst_34 [1, 2, 3] : vector<1x1x16x128xf32> to vector<1xf32>
    %70 = vector.shape_cast %69 : vector<1xf32> to vector<1x1x1x1xf32>
    %71 = vector.extract %70[0, 0, 0, 0] : f32 from vector<1x1x1x1xf32>
    %72 = tpu.iota {dimensions = array<i32: 3>} : vector<1x1x1x128xi32>
    %c0_i32_35 = arith.constant 0 : i32
    %73 = vector.broadcast %c0_i32_35 : i32 to vector<1x1x1x128xi32>
    %74 = arith.cmpi eq, %72, %73 : vector<1x1x1x128xi32>
    %cst_36 = arith.constant 0.000000e+00 : f32
    %75 = vector.broadcast %35 : f32 to vector<1x1x1x128xf32>
    %76 = vector.broadcast %cst_36 : f32 to vector<1x1x1x128xf32>
    %77 = arith.select %74, %75, %76 : vector<1x1x1x128xi1>, vector<1x1x1x128xf32>
    %c1_i32_37 = arith.constant 1 : i32
    %78 = vector.broadcast %c1_i32_37 : i32 to vector<1x1x1x128xi32>
    %79 = arith.cmpi eq, %72, %78 : vector<1x1x1x128xi32>
    %cst_38 = arith.constant 0.000000e+00 : f32
    %80 = vector.broadcast %39 : f32 to vector<1x1x1x128xf32>
    %81 = vector.broadcast %cst_38 : f32 to vector<1x1x1x128xf32>
    %82 = arith.select %79, %80, %81 : vector<1x1x1x128xi1>, vector<1x1x1x128xf32>
    %83 = arith.addf %77, %82 : vector<1x1x1x128xf32>
    %c2_i32 = arith.constant 2 : i32
    %84 = vector.broadcast %c2_i32 : i32 to vector<1x1x1x128xi32>
    %85 = arith.cmpi eq, %72, %84 : vector<1x1x1x128xi32>
    %cst_39 = arith.constant 0.000000e+00 : f32
    %86 = vector.broadcast %43 : f32 to vector<1x1x1x128xf32>
    %87 = vector.broadcast %cst_39 : f32 to vector<1x1x1x128xf32>
    %88 = arith.select %85, %86, %87 : vector<1x1x1x128xi1>, vector<1x1x1x128xf32>
    %89 = arith.addf %83, %88 : vector<1x1x1x128xf32>
    %c3_i32 = arith.constant 3 : i32
    %90 = vector.broadcast %c3_i32 : i32 to vector<1x1x1x128xi32>
    %91 = arith.cmpi eq, %72, %90 : vector<1x1x1x128xi32>
    %cst_40 = arith.constant 0.000000e+00 : f32
    %92 = vector.broadcast %63 : f32 to vector<1x1x1x128xf32>
    %93 = vector.broadcast %cst_40 : f32 to vector<1x1x1x128xf32>
    %94 = arith.select %91, %92, %93 : vector<1x1x1x128xi1>, vector<1x1x1x128xf32>
    %95 = arith.addf %89, %94 : vector<1x1x1x128xf32>
    %c4_i32 = arith.constant 4 : i32
    %96 = vector.broadcast %c4_i32 : i32 to vector<1x1x1x128xi32>
    %97 = arith.cmpi eq, %72, %96 : vector<1x1x1x128xi32>
    %cst_41 = arith.constant 0.000000e+00 : f32
    %98 = vector.broadcast %67 : f32 to vector<1x1x1x128xf32>
    %99 = vector.broadcast %cst_41 : f32 to vector<1x1x1x128xf32>
    %100 = arith.select %97, %98, %99 : vector<1x1x1x128xi1>, vector<1x1x1x128xf32>
    %101 = arith.addf %95, %100 : vector<1x1x1x128xf32>
    %c5_i32 = arith.constant 5 : i32
    %102 = vector.broadcast %c5_i32 : i32 to vector<1x1x1x128xi32>
    %103 = arith.cmpi eq, %72, %102 : vector<1x1x1x128xi32>
    %cst_42 = arith.constant 0.000000e+00 : f32
    %104 = vector.broadcast %71 : f32 to vector<1x1x1x128xf32>
    %105 = vector.broadcast %cst_42 : f32 to vector<1x1x1x128xf32>
    %106 = arith.select %103, %104, %105 : vector<1x1x1x128xi1>, vector<1x1x1x128xf32>
    %107 = arith.addf %101, %106 : vector<1x1x1x128xf32>
    %c0_43 = arith.constant 0 : index
    %c0_44 = arith.constant 0 : index
    %c0_45 = arith.constant 0 : index
    %c0_46 = arith.constant 0 : index
    %108 = vector.load %arg10[%c0_43, %c0_44, %c0_45, %c0_46] : memref<1x1x1x128xf32, #tpu.memory_space<vmem>>, vector<1x1x1x128xf32>
    %109 = arith.addf %108, %107 : vector<1x1x1x128xf32>
    %c0_47 = arith.constant 0 : index
    %c0_48 = arith.constant 0 : index
    %c0_49 = arith.constant 0 : index
    %c0_50 = arith.constant 0 : index
    %110 = vector.load %arg10[%c0_47, %c0_48, %c0_49, %c0_50] : memref<1x1x1x128xf32, #tpu.memory_space<vmem>>, vector<1x1x1x128xf32>
    tpu.vector_store %arg10[%c0_47, %c0_48, %c0_49, %c0_50], %109 {strides = array<i32>} : memref<1x1x1x128xf32, #tpu.memory_space<vmem>>, vector<1x1x1x128xf32>,
    return
  }
  func.func @transform_0(%arg0: i32, %arg1: i32, %arg2: i32) -> (i32, i32, i32) {
    %c1_i32 = arith.constant 1 : i32
    %0 = arith.muli %arg1, %c1_i32 : i32
    %1 = arith.addi %0, %arg2 : i32
    %c0_i32 = arith.constant 0 : i32
    %c0_i32_0 = arith.constant 0 : i32
    return %arg0, %1, %c0_i32 : i32, i32, i32
  }
  func.func @transform_1(%arg0: i32, %arg1: i32, %arg2: i32) -> (i32, i32, i32) {
    %c1_i32 = arith.constant 1 : i32
    %0 = arith.muli %arg1, %c1_i32 : i32
    %1 = arith.addi %0, %arg2 : i32
    %c0_i32 = arith.constant 0 : i32
    %c0_i32_0 = arith.constant 0 : i32
    return %arg0, %1, %c0_i32 : i32, i32, i32
  }
  func.func @transform_2(%arg0: i32, %arg1: i32, %arg2: i32) -> (i32, i32, i32) {
    %c1_i32 = arith.constant 1 : i32
    %0 = arith.muli %arg1, %c1_i32 : i32
    %1 = arith.addi %0, %arg2 : i32
    %c0_i32 = arith.constant 0 : i32
    %c0_i32_0 = arith.constant 0 : i32
    return %arg0, %1, %c0_i32 : i32, i32, i32
  }
  func.func @transform_3(%arg0: i32, %arg1: i32, %arg2: i32) -> (i32, i32, i32) {
    %c1_i32 = arith.constant 1 : i32
    %0 = arith.muli %arg1, %c1_i32 : i32
    %1 = arith.addi %0, %arg2 : i32
    %c0_i32 = arith.constant 0 : i32
    %c0_i32_0 = arith.constant 0 : i32
    return %arg0, %1, %c0_i32 : i32, i32, i32
  }
  func.func @transform_4(%arg0: i32, %arg1: i32, %arg2: i32) -> (i32, i32, i32) {
    %c1_i32 = arith.constant 1 : i32
    %0 = arith.muli %arg1, %c1_i32 : i32
    %1 = arith.addi %0, %arg2 : i32
    %c0_i32 = arith.constant 0 : i32
    %c0_i32_0 = arith.constant 0 : i32
    return %arg0, %1, %c0_i32 : i32, i32, i32
  }
  func.func @transform_5(%arg0: i32, %arg1: i32, %arg2: i32) -> (i32, i32, i32) {
    %c1_i32 = arith.constant 1 : i32
    %0 = arith.muli %arg1, %c1_i32 : i32
    %1 = arith.addi %0, %arg2 : i32
    %c0_i32 = arith.constant 0 : i32
    %c0_i32_0 = arith.constant 0 : i32
    return %arg0, %1, %c0_i32 : i32, i32, i32
  }
  func.func @transform_6(%arg0: i32, %arg1: i32, %arg2: i32) -> (i32, i32, i32) {
    %c1_i32 = arith.constant 1 : i32
    %0 = arith.muli %arg1, %c1_i32 : i32
    %1 = arith.addi %0, %arg2 : i32
    %c0_i32 = arith.constant 0 : i32
    %c0_i32_0 = arith.constant 0 : i32
    return %arg0, %1, %c0_i32 : i32, i32, i32
  }
  func.func @transform_7(%arg0: i32, %arg1: i32, %arg2: i32) -> (i32, i32, i32, i32) {
    %c0_i32 = arith.constant 0 : i32
    %c0_i32_0 = arith.constant 0 : i32
    %c0_i32_1 = arith.constant 0 : i32
    return %arg0, %arg1, %c0_i32, %c0_i32_0 : i32, i32, i32, i32
  }
}

</mosaic_0001>

<bundles_post_ra>
// kernel: maploss_v3.1
= control target key start
LH: loop header
LB: loop body
LE: loop exit
PB: predicated region body
PF: predicated region fallthrough
CT: control target
= control target key end

     0   :  { %s1624_s0 = inlined_call_operand.hbm [shape: f32[2,16,128], index: 0, kind: input, shape index: {}]   ;;  %s1625_s1 = inlined_call_operand.hbm [shape: f32[2,16,128], index: 1, kind: input, shape index: {}]   ;;  %s1626_s2 = inlined_call_operand.hbm [shape: f32[2,16,128], index: 2, kind: input, shape index: {}]   ;;  %s1627_s3 = inlined_call_operand.hbm [shape: f32[2,16,128], index: 3, kind: input, shape index: {}]   ;;  %s1628_s4 = inlined_call_operand.hbm [shape: f32[2,16,128], index: 4, kind: input, shape index: {}]   ;;  %s1629_s5 = inlined_call_operand.vmem [shape: f32[2,16,128], index: 5, kind: output, shape index: {0}]   ;;  %s1630_s6 = inlined_call_operand.vmem [shape: f32[2,16,128], index: 6, kind: output, shape index: {1}]   ;;  %s1631_s7 = inlined_call_operand.vmem [shape: f32[2,1,1,128], index: 7, kind: output, shape index: {2}]  }
   0x1   :  { %1637 = sst [smem:[#allocation16_spill]] %s1625_s1 }
   0x2   :  { %1638 = sst [smem:[#allocation17_spill]] %s1627_s3 }
   0x3   :  { %1639 = sst [smem:[#allocation18_spill]] %s1629_s5 }
   0x4   :  { %1640 = sst [smem:[#allocation19_spill]] %s1630_s6 }
   0x5   :  { %1641 = sst [smem:[#allocation20_spill]] %s1631_s7 }
   0x6   :  { %13 = vsyncpa [#allocation3], 0 }
   0x7   :  { %15 = vsyncpa [#allocation3 + $0x1], 0 }
   0x8   :  { %16 = vsyncpa [#allocation5], 0 }
   0x9   :  { %18 = vsyncpa [#allocation5 + $0x1], 0 }
   0xa   :  { %19 = vsyncpa [#allocation8], 0 }
   0xb   :  { %21 = vsyncpa [#allocation8 + $0x1], 0  ;;  %s1402_s24 = smov 0   ;;  %s1404_s25 = smov 0  }
   0xc   :  { %s1406_s26 = smov 0   ;;  %s1408_s27 = smov 0  }
   0xd   :  { %s1410_s28 = smov 0   ;;  %s1412_s29 = smov 0  }
   0xe LB: > { %1642 = sst [smem:[#allocation13_spill]] %s1348_s28  ;;  %s1632_s30 = sadd.s32 4294967295, %s1352_s29   ;;  %s1352_s29 = sphi %s1412_s29, %s27_s29   ;;  %s1348_s28 = sphi %s1410_s28, %s1659_s28   ;;  %s1344_s27 = sphi %s1408_s27, %s1658_s27   ;;  %s1340_s26 = sphi %s1406_s26, %s1662_s26   ;;  %s1336_s25 = sphi %s1404_s25, %s1661_s25   ;;  %s1332_s24 = sphi %s1402_s24, %s1660_s24  }
   0xf   : > { %s46_s8 = sadd.s32 1, %s1348_s28  ;;  %s57_s9 = sadd.s32 1, %s1340_s26 }
  0x10   : > { %p48_p0 = scmp.ge.s32.totalorder %s46_s8, 2  ;;  %p64_p1 = scmp.ne.s32.totalorder %s1340_s26, %s1336_s25 }
  0x11   : > { %p65_p2 = scmp.eq.s32.totalorder %s1352_s29, 0  ;;  %p70_p4 = scmp.ne.s32.totalorder %s1336_s25, %s1332_s24 }
  0x12   : > { %s1664_s8 = smov (%p48_p0, %s46_s8), 0  ;;  %p71_p5 = scmp.eq.s32.totalorder %s1632_s30, 0 }
  0x13   : > { %1643 = sst [smem:[#allocation14_spill]] %s1664_s8  ;;  %p66_p3 = por %p65_p2, %p64_p1 }
  0x14   : > { %s52_s10 = ssub.s32 %s1348_s28, %s1664_s8  ;;  %p1443_p7 = por %p71_p5, %p70_p4 }
  0x15   : > { %p55_p6 = scmp.eq.s32.totalorder %s52_s10, 0  ;;  %p1102_p8 = scmp.lt.s32.totalorder %s1352_s29, 2 }
  0x16   : > { %s1633_s13 = sand.u32 1, %s1340_s26   ;;  %s1453_s14 = sshll.u32 %s1348_s28, 8 }
  0x17   : > { %s1449_s12 = scalar_select %p55_p6, %s1340_s26, %s57_s9  }
  0x18   : > { %s1457_s15 = sshll.u32 %s1633_s13, 4  ;;  %p1459_p9 = pnand %p1102_p8, %p66_p3 }
  0x19   : > { %1645 = sst [smem:[#allocation15_spill]] %s1449_s12  ;;  %s1634_s17 = sand.u32 1, %s1352_s29  }
  0x1a   : > { %s1647_s1 = sld [smem:[#allocation16_spill]]  ;;  %s330_s21 = scalar_lea.vmem [#allocation4], %s1457_s15 }
  0x1b   : > { %s340_s22 = sshll.u32 %s330_s21, 4  ;;  %p1045_p10 = scmp.ge.s32.totalorder %s1352_s29, 1  ;;  %s341_s22 = int_to_ptr.vmem [resolvable:$true] %s340_s22 }
  0x1c   : > { %s1472_s23 = scalar_lea.sflag [#allocation5], %s1634_s17  ;;  %p1476_p11 = pneg %p1459_p9 }
  0x1d   : > { %s1167_s9 = scalar_lea.vmem %s341_s22, 256  ;;  %s1354_s10 = smov [#allocation4]  }
  0x1e   : > { %p1168_p12 = scmp.ne.s32.totalorder %s341_s22, %s1167_s9  ;;  %s1172_s18 = sshll.u32 %s1354_s10, 4  ;;  %s1173_s18 = int_to_ptr.vmem [resolvable:$false] %s1172_s18 }
  0x1f   : > { %s1174_s19 = scalar_lea.vmem %s1173_s18, 512  ;;  %p1175_p1 = scmp.lt.s32.totalorder %s341_s22, %s1173_s18 }
  0x20   : > { %s339_s20 = scalar_lea.hbm %s1647_s1, %s1453_s14  ;;  %p1170_p13 = pnand %p1168_p12, %p1476_p11 }
  0x21   : > { %p1176_p2 = scmp.lt.s32.totalorder %s1174_s19, %s1167_s9 }
  0x22   : > { %p1171_p0 = pneg %p1170_p13 }
  0x23   : > { %p1177_p3 = por %p1176_p2, %p1175_p1 }
  0x25   : > { %p1178_p4 = pnand %p1177_p3, %p1171_p0 }
  0x27   : > { %1181 = shalt.err (!%p1178_p4)
}
  0x28   : > { %s1355_s21 = smov 128   ;;  %s1356_s30 = smov 8  }
  0x29   : > { %1092 = dma.hbm_to_vmem [thread:$0]  (!%p1459_p9), %s339_s20, 256, %s341_s22, %s1472_s23, %s1355_s21, %s1355_s21, %s1356_s30  }
  0x2a   : > { %p420_p5 = scmp.lt.s32.totalorder %s1352_s29, 3  ;;  %s1649_s3 = sld [smem:[#allocation17_spill]] }
  0x2b   : > { %s378_s13 = scalar_lea.vmem [#allocation7], %s1457_s15  ;;  %s1651_s1 = sand.u32 1, %s1352_s29  }
  0x2c   : > { %p1495_p6 = pnand %p1045_p10, %p420_p5  ;;  %s388_s17 = sshll.u32 %s378_s13, 4  ;;  %s389_s17 = int_to_ptr.vmem [resolvable:$true] %s388_s17 }
  0x2d   : > { %s1502_s8 = scalar_lea.sflag [#allocation8], %s1651_s1  ;;  %s1195_s28 = scalar_lea.vmem %s389_s17, 256 }
  0x2e   : > { %p1196_p8 = scmp.ne.s32.totalorder %s389_s17, %s1195_s28  ;;  %s1357_s20 = smov [#allocation7]  }
  0x2f   : > { %s1200_s22 = sshll.u32 %s1357_s20, 4  ;;  %s1201_s22 = int_to_ptr.vmem [resolvable:$false] %s1200_s22 }
  0x30   : > { %s387_s18 = scalar_lea.hbm %s1649_s3, %s1453_s14  ;;  %p1198_p12 = pnand %p1196_p8, %p1476_p11 }
  0x31   : > { %s1202_s9 = scalar_lea.vmem %s1201_s22, 512  ;;  %p1203_p0 = scmp.lt.s32.totalorder %s389_s17, %s1201_s22 }
  0x32   : > { %p1199_p13 = pneg %p1198_p12  ;;  %p1204_p10 = scmp.lt.s32.totalorder %s1202_s9, %s1195_s28 }
  0x34   : > { %p1205_p1 = por %p1204_p10, %p1203_p0 }
  0x36   : > { %p1206_p2 = pnand %p1205_p1, %p1199_p13 }
  0x38   : > { %1209 = shalt.err (!%p1206_p2)
}
  0x39   : > { %1098 = dma.hbm_to_vmem [thread:$0]  (!%p1459_p9), %s387_s18, 256, %s389_s17, %s1502_s8, %s1355_s21, %s1355_s21, %s1356_s30  }
  0x3a   : > { %s315_s10 = scalar_lea.hbm %s1624_s0, %s1453_s14  ;;  %s306_s28 = scalar_lea.vmem [#allocation2], %s1457_s15 }
  0x3b   : > { %s316_s20 = sshll.u32 %s306_s28, 4  ;;  %s363_s3 = scalar_lea.hbm %s1626_s2, %s1453_s14  ;;  %s317_s20 = int_to_ptr.vmem [resolvable:$true] %s316_s20 }
  0x3c   : > { %s1652_s12 = sand.u32 1, %s1340_s26   ;;  %s1223_s6 = scalar_lea.vmem %s317_s20, 256 }
  0x3d   : > { %s303_s7 = scalar_lea.sflag [#allocation3], %s1652_s12  ;;  %p1224_p3 = scmp.ne.s32.totalorder %s317_s20, %s1223_s6 }
  0x3e   : > { %s1358_s5 = smov [#allocation2]  }
  0x3f   : > { %p1226_p4 = pnand %p1224_p3, %p1476_p11  ;;  %s1228_s17 = sshll.u32 %s1358_s5, 4  ;;  %s1229_s17 = int_to_ptr.vmem [resolvable:$false] %s1228_s17 }
  0x40   : > { %s1230_s18 = scalar_lea.vmem %s1229_s17, 512  ;;  %p1231_p8 = scmp.lt.s32.totalorder %s317_s20, %s1229_s17 }
  0x41   : > { %p1227_p5 = pneg %p1226_p4  ;;  %p1232_p12 = scmp.lt.s32.totalorder %s1230_s18, %s1223_s6 }
  0x43   : > { %p1233_p13 = por %p1232_p12, %p1231_p8 }
  0x45   : > { %p1234_p0 = pnand %p1233_p13, %p1227_p5 }
  0x47   : > { %1237 = shalt.err (!%p1234_p0)
}
  0x48   : > { %1089 = dma.hbm_to_vmem [thread:$0]  (!%p1459_p9), %s315_s10, 256, %s317_s20, %s303_s7, %s1355_s21, %s1355_s21, %s1356_s30  }
  0x49   : > { %s354_s12 = scalar_lea.vmem [#allocation6], %s1457_s15  ;;  %s411_s28 = scalar_lea.hbm %s1628_s4, %s1453_s14 }
  0x4a   : > { %s364_s1 = sshll.u32 %s354_s12, 4  ;;  %s1359_s22 = smov [#allocation6]   ;;  %s365_s1 = int_to_ptr.vmem [resolvable:$true] %s364_s1 }
  0x4b   : > { %s1251_s6 = scalar_lea.vmem %s365_s1, 256  ;;  %s1256_s9 = sshll.u32 %s1359_s22, 4  ;;  %s1257_s9 = int_to_ptr.vmem [resolvable:$false] %s1256_s9 }
  0x4c   : > { %p1252_p10 = scmp.ne.s32.totalorder %s365_s1, %s1251_s6  ;;  %s1258_s17 = scalar_lea.vmem %s1257_s9, 512 }
  0x4d   : > { %p1259_p3 = scmp.lt.s32.totalorder %s365_s1, %s1257_s9  ;;  %p1260_p4 = scmp.lt.s32.totalorder %s1258_s17, %s1251_s6 }
  0x4e   : > { %p1254_p1 = pnand %p1252_p10, %p1476_p11 }
  0x4f   : > { %p1261_p5 = por %p1260_p4, %p1259_p3 }
  0x50   : > { %p1255_p2 = pneg %p1254_p1 }
  0x52   : > { %p1262_p8 = pnand %p1261_p5, %p1255_p2 }
  0x54   : > { %1265 = shalt.err (!%p1262_p8)
}
  0x55   : > { %1095 = dma.hbm_to_vmem [thread:$0]  (!%p1459_p9), %s363_s3, 256, %s365_s1, %s1472_s23, %s1355_s21, %s1355_s21, %s1356_s30  }
  0x56   : > { %s402_s20 = scalar_lea.vmem [#allocation9], %s1457_s15  ;;  %s1360_s5 = smov [#allocation9]  }
  0x57   : > { %s412_s18 = sshll.u32 %s402_s20, 4  ;;  %s1284_s13 = sshll.u32 %s1360_s5, 4  ;;  %s413_s18 = int_to_ptr.vmem [resolvable:$true] %s412_s18  ;;  %s1285_s13 = int_to_ptr.vmem [resolvable:$false] %s1284_s13 }
  0x58   : > { %s1279_s12 = scalar_lea.vmem %s413_s18, 256  ;;  %s1286_s6 = scalar_lea.vmem %s1285_s13, 512 }
  0x59   : > { %p1280_p12 = scmp.ne.s32.totalorder %s413_s18, %s1279_s12  ;;  %p1287_p10 = scmp.lt.s32.totalorder %s413_s18, %s1285_s13 }
  0x5a   : > { %p1288_p1 = scmp.lt.s32.totalorder %s1286_s6, %s1279_s12 }
  0x5b   : > { %p1282_p13 = pnand %p1280_p12, %p1476_p11 }
  0x5c   : > { %p1289_p2 = por %p1288_p1, %p1287_p10 }
  0x5d   : > { %p1283_p0 = pneg %p1282_p13 }
  0x5f   : > { %p1290_p3 = pnand %p1289_p2, %p1283_p0 }
  0x61   : > { %1293 = shalt.err (!%p1290_p3)
}
  0x62   : > { %1101 = dma.hbm_to_vmem [thread:$0]  (!%p1459_p9), %s411_s28, 256, %s413_s18, %s1502_s8, %s1355_s21, %s1355_s21, %s1356_s30  }
  0x63   : > { %424 = sbr.rel (%p1495_p6) target bundleno = 339 (0x153), region = 40  ;;  %s426_s23 = sand.u32 (!%p1495_p6), 1, %s1336_s25  }
  0x64   : > { %s1565_s24 = sshll.u32 (!%p1495_p6), %s426_s23, 4  ;;  %s427_s16 = scalar_lea.sflag (!%p1495_p6), [#allocation3], %s426_s23 }
  0x65   : > { %s430_s1 = scalar_lea.vmem (!%p1495_p6), [#allocation2], %s1565_s24 }
  0x68   : > { %1319 = dma.done.wait (%p1443_p7), %s427_s16, 256  }
  0x69   : > { %1321 = vsyncadd (%p1443_p7), %s427_s16, 4294967040  ;;  %s1653_s22 = sadd.s32 4294967295, %s1352_s29   ;;  %s439_s14 = scalar_lea.vmem [#allocation4], %s1565_s24 }
  0x6a   : > { %s435_s30 = sand.u32 1, %s1653_s22  }
  0x6b   : > { %s436_s8 = scalar_lea.sflag [#allocation5], %s435_s30 }
  0x6c   : > { %1323 = dma.done.wait (%p1443_p7), %s436_s8, 512  }
  0x6d   : > { %1325 = vsyncadd (%p1443_p7), %s436_s8, 4294966784  ;;  %s448_s21 = scalar_lea.vmem [#allocation6], %s1565_s24  ;;  %s454_s19 = scalar_lea.sflag [#allocation8], %s435_s30 }
  0x6e   : > { %s457_s28 = scalar_lea.vmem [#allocation7], %s1565_s24 }
  0x6f   : > { %1327 = dma.done.wait (%p1443_p7), %s454_s19, 512  }
  0x70   : > { %1329 = vsyncadd (%p1443_p7), %s454_s19, 4294966784  ;;  %p550_p9 = scmp.lt.s32.totalorder %s1344_s27, 1  ;;  %v600_v0 = vld [vmem:[%s430_s1] sm:$0xff]  ;;  %v601_v1 = vld [vmem:[%s430_s1 + $0x8] sm:$0xff]  ;;  %s466_s9 = scalar_lea.vmem [#allocation9], %s1565_s24  ;;  %v1361_v7 = vmov 0.0  }
  0x71   : > { %v602_v2 = vld [vmem:[%s439_s14] sm:$0xff]  ;;  %v603_v3 = vld [vmem:[%s439_s14 + $0x8] sm:$0xff]  ;;  %vm612_vm0 = vcmp.ge.f32.partialorder %v600_v0, 0.1  ;;  %vm613_vm1 = vcmp.ge.f32.partialorder %v601_v1, 0.1 }
  0x72   : > { %v598_v4 = vld [vmem:[%s466_s9] sm:$0xff]  ;;  %v604_v5 = vsub.f32 %v602_v2, %v600_v0  ;;  %s1666_s27 = smov (!%p550_p9, %s1344_s27), 1  ;;  %v605_v6 = vsub.f32 %v603_v3, %v601_v1  ;;  %v616_v8 = vsel %vm612_vm0, 1.0, %v1361_v7  ;;  %v617_v9 = vsel %vm613_vm1, 1.0, %v1361_v7  ;;  %v599_v10 = vld [vmem:[%s466_s9 + $0x8] sm:$0xff]  ;;  %s1654_s10 = sld [smem:[#allocation18_spill]] }
  0x73   : > { %v654_v11 = vld [vmem:[%s448_s21] sm:$0xff]  ;;  %v655_v12 = vld [vmem:[%s448_s21 + $0x8] sm:$0xff]  ;;  %v624_v13 = vadd.f32 %v617_v9, %v616_v8  ;;  %s1062_s11 = sshll.u32 %s1666_s27, 4  ;;  %s1655_s5 = sld [smem:[#allocation19_spill]] }
  0x74   : > { %v606_v14 = vmul.f32 %v604_v5, %v604_v5  ;;  %v656_v15 = vld [vmem:[%s457_s28] sm:$0xff]  ;;  %v657_v16 = vld [vmem:[%s457_s28 + $0x8] sm:$0xff]  ;;  %vm666_vm2 = vcmp.ge.f32.partialorder %v654_v11, 0.1  ;;  %vm667_vm3 = vcmp.ge.f32.partialorder %v655_v12, 0.1  ;;  %v607_v17 = vmul.f32 %v605_v6, %v605_v6 }
  0x75   : > { %v658_v18 = vsub.f32 %v656_v15, %v654_v11  ;;  %v659_v19 = vsub.f32 %v657_v16, %v655_v12  ;;  %625 = vadd.xlane.f32.xlu0 %v624_v13  ;;  %v670_v21 = vsel %vm666_vm2, 1.0, %v1361_v7  ;;  %v671_v25 = vsel %vm667_vm3, 1.0, %v1361_v7  ;;  %s1656_s15 = sld [smem:[#allocation20_spill]] }
  0x76   : > { %v608_v20 = vmul.f32 %v606_v14, %v598_v4  ;;  %v609_v22 = vmul.f32 %v607_v17, %v599_v10  ;;  %v678_v32 = vadd.f32 %v671_v25, %v670_v21 }
  0x77   : > { %v660_v23 = vmul.f32 %v658_v18, %v658_v18  ;;  %v661_v24 = vmul.f32 %v659_v19, %v659_v19  ;;  %v588_v19 = vlaneseq }
  0x78   : > { %v618_v26 = vmul.f32 %v616_v8, %v608_v20  ;;  %s557_s20 = scalar_lea.vmem %s1654_s10, %s1062_s11  ;;  %v619_v27 = vmul.f32 %v617_v9, %v609_v22  ;;  %v644_v28 = vadd.f32 %v609_v22, %v608_v20 }
  0x79   : > { %v662_v29 = vmul.f32 %v660_v23, %v598_v4  ;;  %v663_v30 = vmul.f32 %v661_v24, %v599_v10  ;;  %s569_s13 = scalar_lea.vmem %s1655_s5, %s1062_s11 }
  0x7a   : > { %v620_v31 = vsub.f32 %v608_v20, %v618_v26  ;;  %v621_v33 = vsub.f32 %v609_v22, %v619_v27  ;;  %645 = vadd.xlane.f32.xlu1 %v644_v28  ;;  %v634_v34 = vadd.f32 %v619_v27, %v618_v26  ;;  %v589_v20 = vand.u32 127, %v588_v19 }
  0x7b   : > { %v672_v35 = vmul.f32 %v670_v21, %v662_v29  ;;  %v673_v36 = vmul.f32 %v671_v25, %v663_v30  ;;  %v698_v40 = vadd.f32 %v663_v30, %v662_v29  ;;  %s1601_s23 = scalar_lea.vmem %s1656_s15, %s1666_s27 }
  0x7c   : > { %622 = vst [vmem:[%s557_s20] sm:$0xff] %v620_v31  ;;  %623 = vst [vmem:[%s557_s20 + $0x8] sm:$0xff] %v621_v33  ;;  %635 = vadd.xlane.f32.xlu0 %v634_v34  ;;  %vm708_vm4 = vcmp.eq.s32.totalorder %v589_v20, 0  ;;  %vm711_vm5 = vcmp.eq.s32.totalorder %v589_v20, 1  ;;  %vm715_vm6 = vcmp.eq.s32.totalorder %v589_v20, 2  ;;  %vm719_vm7 = vcmp.eq.s32.totalorder %v589_v20, 3 }
  0x7d   : > { %v674_v37 = vsub.f32 %v662_v29, %v672_v35  ;;  %v675_v38 = vsub.f32 %v663_v30, %v673_v36  ;;  %v688_v39 = vadd.f32 %v673_v36, %v672_v35  ;;  %582 = vst [vmem:[%s1601_s23] sm:$0x1] %v1361_v7  ;;  %vm723_vm8 = vcmp.eq.s32.totalorder %v589_v20, 4 }
  0x7e   : > { %679 = vadd.xlane.f32.xlu1 %v678_v32  ;;  %vm727_vm9 = vcmp.eq.s32.totalorder %v589_v20, 5 }
  0x7f   : > { %676 = vst [vmem:[%s569_s13] sm:$0xff] %v674_v37  ;;  %677 = vst [vmem:[%s569_s13 + $0x8] sm:$0xff] %v675_v38 }
  0x80   : > { %689 = vadd.xlane.f32.xlu0 %v688_v39 }
  0x82   : > { %699 = vadd.xlane.f32.xlu1 %v698_v40 }
  0x84   : > { %v731_v37 = vld [vmem:[%s1601_s23] sm:$0x1] }
  0xfe   : > { %v626_v41 = vpop.xlane.xlu0 %625 }
  0xff   : > { %v627_v42 = vrot.slane %v626_v41, 4 }
 0x101   : > { %v628_v43 = vadd.f32 %v627_v42, %v626_v41 }
 0x103   : > { %v629_v44 = vrot.slane %v628_v43, 2  ;;  %v646_v45 = vpop.xlane.xlu1 %645 }
 0x104   : > { %v647_v46 = vrot.slane %v646_v45, 4 }
 0x105   : > { %v636_v47 = vpop.xlane.xlu0 %635  ;;  %v630_v48 = vadd.f32 %v629_v44, %v628_v43 }
 0x106   : > { %v648_v49 = vadd.f32 %v647_v46, %v646_v45  ;;  %v637_v50 = vrot.slane %v636_v47, 4 }
 0x107   : > { %v680_v51 = vpop.xlane.xlu1 %679  ;;  %v631_v52 = vrot.slane %v630_v48, 1 }
 0x108   : > { %v649_v53 = vrot.slane %v648_v49, 2  ;;  %v638_v54 = vadd.f32 %v637_v50, %v636_v47  ;;  %v681_v55 = vrot.slane %v680_v51, 4 }
 0x109   : > { %v690_v56 = vpop.xlane.xlu0 %689  ;;  %v632_v57 = vadd.f32 %v631_v52, %v630_v48 }
 0x10a   : > { %v639_v58 = vrot.slane %v638_v54, 2  ;;  %v682_v59 = vadd.f32 %v681_v55, %v680_v51  ;;  %v691_v60 = vrot.slane %v690_v56, 4  ;;  %v650_v61 = vadd.f32 %v649_v53, %v648_v49 }
 0x10b   : > { %v700_v62 = vpop.xlane.xlu1 %699  ;;  %1064 = vpush %v632_v57 }
 0x10c   : > { %v683_v63 = vrot.slane %v682_v59, 2  ;;  %v692_v0 = vadd.f32 %v691_v60, %v690_v56  ;;  %v701_v1 = vrot.slane %v700_v62, 4  ;;  %v640_v2 = vadd.f32 %v639_v58, %v638_v54 }
 0x10d   : > { %v651_v3 = vrot.slane %v650_v61, 1 }
 0x10e   : > { %v693_v4 = vrot.slane %v692_v0, 2  ;;  %v702_v5 = vadd.f32 %v701_v1, %v700_v62  ;;  %v641_v6 = vrot.slane %v640_v2, 1  ;;  %v684_v7 = vadd.f32 %v683_v63, %v682_v59 }
 0x10f   : > { %v652_v12 = vadd.f32 %v651_v3, %v650_v61 }
 0x110   : > { %v694_v8 = vadd.f32 %v693_v4, %v692_v0  ;;  %v703_v9 = vrot.slane %v702_v5, 2  ;;  %v642_v10 = vadd.f32 %v641_v6, %v640_v2  ;;  %v685_v11 = vrot.slane %v684_v7, 1 }
 0x112   : > { %v704_v13 = vadd.f32 %v703_v9, %v702_v5  ;;  %1066 = vpush %v642_v10  ;;  %v686_v14 = vadd.f32 %v685_v11, %v684_v7  ;;  %v695_v15 = vrot.slane %v694_v8, 1 }
 0x113   : > { %1068 = vpush %v652_v12 }
 0x114   : > { %1070 = vpush %v686_v14  ;;  %v696_v16 = vadd.f32 %v695_v15, %v694_v8  ;;  %v705_v17 = vrot.slane %v704_v13, 1 }
 0x116   : > { %1072 = vpush %v696_v16  ;;  %v706_v18 = vadd.f32 %v705_v17, %v704_v13 }
 0x118   : > { %1074 = vpush %v706_v18 }
 0x13c   : > { %s1065_s27 = spop %1064 }
 0x13d   : > { %v709_v21 = vstv %s1065_s27 }
 0x13e   : > { %v710_v23 = vsel %vm708_vm4, %v709_v21, 0.0 }
 0x143   : > { %s1067_s24 = spop %1066 }
 0x144   : > { %v712_v22 = vstv %s1067_s24  ;;  %s1069_s16 = spop %1068 }
 0x145   : > { %v713_v24 = vsel %vm711_vm5, %v712_v22, 0.0  ;;  %v716_v25 = vstv %s1069_s16  ;;  %s1071_s1 = spop %1070 }
 0x146   : > { %v714_v26 = vadd.f32 %v713_v24, %v710_v23  ;;  %v720_v27 = vstv %s1071_s1  ;;  %v717_v28 = vsel %vm715_vm6, %v716_v25, 0.0 }
 0x147   : > { %s1073_s22 = spop %1072  ;;  %v721_v31 = vsel %vm719_vm7, %v720_v27, 0.0 }
 0x148   : > { %v718_v29 = vadd.f32 %v717_v28, %v714_v26  ;;  %v724_v30 = vstv %s1073_s22 }
 0x149   : > { %s1075_s30 = spop %1074  ;;  %v725_v34 = vsel %vm723_vm8, %v724_v30, 0.0 }
 0x14a   : > { %v722_v32 = vadd.f32 %v721_v31, %v718_v29  ;;  %v728_v33 = vstv %s1075_s30 }
 0x14b   : > { %v729_v36 = vsel %vm727_vm9, %v728_v33, 0.0 }
 0x14c   : > { %v726_v35 = vadd.f32 %v725_v34, %v722_v32 }
 0x14e   : > { %v730_v38 = vadd.f32 %v729_v36, %v726_v35 }
 0x150   : > { %v732_v39 = vadd.f32 %v731_v37, %v730_v38 }
 0x152   : > { %733 = vst [vmem:[%s1601_s23] sm:$0x1] %v732_v39 }
 0x153 PF: > { %s27_s29 = sadd.s32 1, %s1352_s29   ;;  %s1657_s8 = sld [smem:[#allocation15_spill]] }
 0x154   : > { %p24_p7 = scmp.ge.s32.totalorder %s27_s29, 4   ;;  %s1658_s27 = sld [smem:[#allocation13_spill]] }
 0x155   : > { %s1659_s28 = sld [smem:[#allocation14_spill]]  ;;  %s1660_s24 = smov %s1336_s25 }
 0x156   : > { %s1661_s25 = smov %s1340_s26  ;;  %26 = sbr.rel (!%p24_p7) target bundleno = 14 (0xe), region = 156 }
 0x159   : > { %s1662_s26 = smov %s1657_s8 }
 0x15b   :  { %813 = vsyncpa [#allocation3], 1 }
 0x15c   :  { %815 = vsyncpa [#allocation3 + $0x1], 1 }
 0x15d   :  { %816 = vsyncpa [#allocation5], 1 }
 0x15e   :  { %818 = vsyncpa [#allocation5 + $0x1], 1 }
 0x15f   :  { %819 = vsyncpa [#allocation8], 1 }
 0x160   :  { %821 = vsyncpa [#allocation8 + $0x1], 1 }

</bundles_post_ra>
